<compile_context>
chip_gen: v5e
topology: v5e:2x2
jax: 0.10.0
libtpu: 0.0.40
codegen_flags: <defaults>
</compile_context>

<pallas_src>
import jax
import jax.numpy as jnp
from jax.experimental import pallas as pl
from jax.experimental.pallas import tpu as pltpu

_LANE = 128                         # vreg lane width: lane-dense view when possible
_MIN_CHUNK_BYTES = 4 * 1024 * 1024  # only split into multiple DMAs above this size
_MAX_OUTSTANDING = 4                # max concurrent DMA chunks


def _pick_chunks(lead_extent, total_bytes):
    """Number of equal, exactly-divisible DMA chunks along the leading dim."""
    for n in range(_MAX_OUTSTANDING, 1, -1):
        if lead_extent % n == 0 and total_bytes // n >= _MIN_CHUNK_BYTES:
            return n
    return 1


def flatten_layer(x):
    """Pallas equivalent of FlattenLayer.forward: x.reshape([-1, x.shape[1]])."""
    C = x.shape[1]
    total = x.size
    M = total // C
    itemsize = jnp.dtype(x.dtype).itemsize

    # Contiguous, element-order-preserving view used purely for the copy.
    # Lane-dense 2-D when possible, flat 1-D otherwise (never the narrow
    # (M, C) view).  Both reshapes around the kernel are metadata-only.
    if total % _LANE == 0:
        view_shape = (total // _LANE, _LANE)
    else:
        view_shape = (total,)
    view = x.reshape(view_shape)

    lead = view_shape[0]
    n_chunks = _pick_chunks(lead, total * itemsize)
    chunk = lead // n_chunks

    def kernel(x_ref, o_ref, sem):
        # Direct HBM->HBM DMA (no VMEM staging).
        if n_chunks == 1:
            cp = pltpu.make_async_copy(x_ref, o_ref, sem.at[0])
            cp.start()
            cp.wait()
        else:
            copies = []
            for i in range(n_chunks):            # static unrolled loop
                start = i * chunk                # static, exact division
                copies.append(pltpu.make_async_copy(
                    x_ref.at[pl.ds(start, chunk)],
                    o_ref.at[pl.ds(start, chunk)],
                    sem.at[i]))
            for cp in copies:                    # multiple outstanding DMAs
                cp.start()
            for cp in copies:
                cp.wait()

    out_view = pl.pallas_call(
        kernel,
        out_shape=jax.ShapeDtypeStruct(view_shape, x.dtype),
        in_specs=[pl.BlockSpec(memory_space=pl.ANY)],
        out_specs=pl.BlockSpec(memory_space=pl.ANY),
        scratch_shapes=[pltpu.SemaphoreType.DMA((n_chunks,))],
        cost_estimate=pl.CostEstimate(
            flops=0, transcendentals=0, bytes_accessed=2 * total * itemsize),
    )(view)

    # Metadata-only reshape to the (M, C) result shape.
    return out_view.reshape(M, C)


if __name__ == "__main__":
    key = jax.random.PRNGKey(0)
    # NCHW input, small shapes: batch=2, channels=4, spatial=16x16.
    x = jax.random.normal(key, (2, 4, 16, 16), dtype=jnp.float32)

    out = jax.block_until_ready(flatten_layer(x))

    # Reference semantics check (== torch.reshape([-1, C])).
    ref = x.reshape(-1, x.shape[1])
    assert out.shape == ref.shape, (out.shape, ref.shape)
    assert out.dtype == ref.dtype
    assert jnp.array_equal(out, ref)

    print("KERNEL_OK")
</pallas_src>

<mosaic_0001>
module attributes {stable_mosaic.version = 11 : i64} {
  func.func @kernel(%arg0: memref<16x128xf32, #tpu.memory_space<any>>, %arg1: memref<16x128xf32, #tpu.memory_space<any>>, %arg2: memref<1x!tpu.dma_semaphore, #tpu.memory_space<semaphore_mem>>) attributes {dimension_semantics = [], scalar_prefetch = 0 : i64, scratch_operands = 1 : i64, tpu.core_type = #tpu.core_type<tc>} {
    %c0_i32 = arith.constant 0 : i32
    %0 = tpu.memref_slice %arg2[%c0_i32] : memref<1x!tpu.dma_semaphore, #tpu.memory_space<semaphore_mem>> -> memref<1x!tpu.dma_semaphore, #tpu.memory_space<semaphore_mem>>
    %1 = tpu.memref_squeeze %0 : memref<1x!tpu.dma_semaphore, #tpu.memory_space<semaphore_mem>> -> memref<!tpu.dma_semaphore, #tpu.memory_space<semaphore_mem>>
    tpu.enqueue_dma source(%arg0 : memref<16x128xf32, #tpu.memory_space<any>>) target(%arg1 : memref<16x128xf32, #tpu.memory_space<any>>) target_semaphore(%1 : memref<!tpu.dma_semaphore, #tpu.memory_space<semaphore_mem>>)
    %c0_i32_0 = arith.constant 0 : i32
    %2 = tpu.memref_slice %arg2[%c0_i32_0] : memref<1x!tpu.dma_semaphore, #tpu.memory_space<semaphore_mem>> -> memref<1x!tpu.dma_semaphore, #tpu.memory_space<semaphore_mem>>
    %3 = tpu.memref_squeeze %2 : memref<1x!tpu.dma_semaphore, #tpu.memory_space<semaphore_mem>> -> memref<!tpu.dma_semaphore, #tpu.memory_space<semaphore_mem>>
    tpu.wait_dma2 semaphore(%3 : memref<!tpu.dma_semaphore, #tpu.memory_space<semaphore_mem>>) src(%arg0 : memref<16x128xf32, #tpu.memory_space<any>>) dst(%arg1 : memref<16x128xf32, #tpu.memory_space<any>>)
    return
  }
}

</mosaic_0001>

<bundles_post_ra>
// kernel: tpu_custom_call.1
= control target key start
LH: loop header
LB: loop body
LE: loop exit
PB: predicated region body
PF: predicated region fallthrough
CT: control target
= control target key end

     0   :  { %s32_s12 = smov [#allocation2]   ;;  %s33_s13 = smov [#allocation3]   ;;  %s51_s0 = inlined_call_operand.hbm [shape: f32[16,128], index: 0, kind: input, shape index: {}]   ;;  %s52_s1 = inlined_call_operand.hbm [shape: f32[16,128], index: 1, kind: output, shape index: {}]  }
   0x1   :  { %s10_s8 = sshll.u32 %s51_s0, 4  ;;  %s12_s11 = sshll.u32 %s52_s1, 4  ;;  %s11_s8 = int_to_ptr.hbm [resolvable:$true] %s10_s8  ;;  %s13_s11 = int_to_ptr.hbm [resolvable:$true] %s12_s11 }
   0x2   :  { %s34_s14 = smov 0  }
   0x3   :  { %16 = dma.general %s11_s8, 256, %s13_s11, %s32_s12, %s33_s13, [#allocation4], %s34_s14, 0  }
   0x4   :  { %30 = dma.done.wait [#allocation2], 256 }
   0x5   :  { %31 = vsyncadd [#allocation2], 4294967040 }
   0x6   :  { %20 = vsyncmov [#allocation2] }
   0x9   :  { %s21_s15 = vpop.sfrf %20 }
   0xa   :  { %p26_p0 = scmp.ne.s32.totalorder %s21_s15, 0 }
   0xc   :  { %25 = shalt.err (%p26_p0)  }

</bundles_post_ra>
